<compile_context>
chip_gen: v6e
topology: v6e:2x2x1
jax: 0.10.0
libtpu: 0.0.40
codegen_flags: <defaults>
</compile_context>

<pallas_src>
import functools

import jax
import jax.numpy as jnp
from jax.experimental import pallas as pl
from jax.experimental.pallas import tpu as pltpu

FOCUSING_PARAM = 2
BALANCE_PARAM = 0.25


def _int_pow(x, p: int):
    """x**p for a static positive integer p, as explicit multiplies."""
    assert p >= 1
    r = x
    for _ in range(p - 1):
        r = r * x
    return r


def focal_loss_kernel(logits_ref, target_ref, out_ref, *, n_rows, block_rows):
    # logits_ref: (TM, C) in the input dtype
    # target_ref: (1, 1, TM) int32  (lane-dense row block)
    # out_ref:    (1, 1, TM) f32    (lane-dense row block)
    x_raw = logits_ref[...]                                   # (TM, C)
    t_row = target_ref[0]                                     # (1, TM) int32
    t_col = jnp.transpose(t_row)                              # (TM, 1) -- XLU slot

    # Fused one-hot gather of the target logit, directly on the raw tile.
    col = jax.lax.broadcasted_iota(jnp.int32, x_raw.shape, 1)
    sel = jnp.where(col == t_col, x_raw, jnp.zeros_like(x_raw))
    tgt = jnp.sum(sel, axis=-1, keepdims=True, dtype=jnp.float32)   # (TM, 1)

    # Numerically stable log-sum-exp in f32.
    x = x_raw.astype(jnp.float32)
    m = jnp.max(x, axis=-1, keepdims=True)                           # (TM, 1)
    lse = jnp.log(jnp.sum(jnp.exp(x - m), axis=-1, keepdims=True))   # (TM, 1)

    logpt = (tgt - m) - lse                                          # log p_target
    pt = jnp.exp(logpt)
    focal = -_int_pow(1.0 - pt, FOCUSING_PARAM) * logpt
    result = BALANCE_PARAM * focal                                   # (TM, 1)

    # Mask pad rows of the ragged tail tile so the padded output stays finite.
    row = (pl.program_id(0) * block_rows
           + jax.lax.broadcasted_iota(jnp.int32, result.shape, 0))
    result = jnp.where(row < n_rows, result, 0.0)

    out_ref[0] = jnp.transpose(result)                               # (1, TM) dense store


def _pick_tm(n, c, itemsize, budget_bytes=4 * 1024 * 1024, max_tm=32768):
    """Row-tile size: ~budget_bytes of raw logits per tile, lane/sublane friendly."""
    bytes_per_row = max(1, c * itemsize)
    tm = budget_bytes // bytes_per_row
    tm = min(tm, max_tm, n)
    if tm >= 128:
        tm = (tm // 128) * 128      # lane-aligned output rows -> unmasked stores
    elif tm >= 8:
        tm = (tm // 8) * 8
    return max(tm, 1)


def focal_loss(logits, target, tm=None):
    n, c = logits.shape
    itemsize = jnp.dtype(logits.dtype).itemsize
    if tm is None:
        tm = _pick_tm(n, c, itemsize)
    num_tiles = pl.cdiv(n, tm)
    n_pad = num_tiles * tm

    t = target.astype(jnp.int32).reshape(n)
    if n_pad != n:
        t = jnp.pad(t, (0, n_pad - n))
    t3 = t.reshape(num_tiles, 1, tm)                 # lane-dense target blocks

    kernel = functools.partial(focal_loss_kernel, n_rows=n, block_rows=tm)

    cost = pl.CostEstimate(
        flops=6 * n * c,
        transcendentals=n * (c + 2),
        bytes_accessed=n * c * itemsize + n_pad * 4 + n_pad * 4,
    )

    out = pl.pallas_call(
        kernel,
        grid=(num_tiles,),
        out_shape=jax.ShapeDtypeStruct((num_tiles, 1, tm), jnp.float32),
        in_specs=[
            pl.BlockSpec((tm, c), lambda i: (i, 0)),
            pl.BlockSpec((1, 1, tm), lambda i: (i, 0, 0)),
        ],
        out_specs=pl.BlockSpec((1, 1, tm), lambda i: (i, 0, 0)),
        compiler_params=pltpu.CompilerParams(
            dimension_semantics=("parallel",),
            vmem_limit_bytes=48 * 1024 * 1024,
        ),
        cost_estimate=cost,
    )(logits, t3)
    return out.reshape(n_pad)[:n]


def focal_loss_ref(logits, target):
    # Pure-JAX reference mirroring the PyTorch module (reduction='none').
    logp = jax.nn.log_softmax(logits.astype(jnp.float32), axis=-1)
    logpt = jnp.take_along_axis(logp, target[:, None].astype(jnp.int32), axis=-1)[:, 0]
    pt = jnp.exp(logpt)
    focal = -((1.0 - pt) ** FOCUSING_PARAM) * logpt
    return BALANCE_PARAM * focal


if __name__ == "__main__":
    key = jax.random.PRNGKey(0)
    k1, k2 = jax.random.split(key)
    N, C = 128, 32
    logits = jax.random.normal(k1, (N, C), dtype=jnp.float32)
    target = jax.random.randint(k2, (N,), 0, C, dtype=jnp.int32)

    # tm=32 -> grid of 4 row tiles, exercising the pipelined multi-tile path.
    out = focal_loss(logits, target, tm=32)
    jax.block_until_ready(out)

    ref = focal_loss_ref(logits, target)
    assert out.shape == (N,), out.shape
    assert jnp.allclose(out, ref, atol=1e-5, rtol=1e-5), (out, ref)

    # Also exercise the default (auto) tile size path once.
    out2 = focal_loss(logits, target)
    jax.block_until_ready(out2)
    assert jnp.allclose(out2, ref, atol=1e-5, rtol=1e-5)

    print("KERNEL_OK")
</pallas_src>

<mosaic_0001>
module attributes {stable_mosaic.version = 11 : i64} {
  func.func @focal_loss_kernel(%arg0: i32, %arg1: memref<32x32xf32, #tpu.memory_space<vmem>>, %arg2: memref<1x1x32xi32, #tpu.memory_space<vmem>>, %arg3: memref<1x1x32xf32, #tpu.memory_space<vmem>>) attributes {dimension_semantics = [#tpu.dimension_semantics<parallel>], iteration_bounds = array<i64: 4>, scalar_prefetch = 0 : i64, scratch_operands = 0 : i64, tpu.core_type = #tpu.core_type<tc>, window_params = [{transform_indices = @transform_0, window_bounds = array<i64: 32, 32>}, {transform_indices = @transform_1, window_bounds = array<i64: 1, 1, 32>}, {transform_indices = @transform_2, window_bounds = array<i64: 1, 1, 32>}]} {
    %c0 = arith.constant 0 : index
    %c0_0 = arith.constant 0 : index
    %0 = vector.load %arg1[%c0, %c0_0] : memref<32x32xf32, #tpu.memory_space<vmem>>, vector<32x32xf32>
    %c0_1 = arith.constant 0 : index
    %c0_2 = arith.constant 0 : index
    %c0_3 = arith.constant 0 : index
    %1 = vector.load %arg2[%c0_1, %c0_2, %c0_3] : memref<1x1x32xi32, #tpu.memory_space<vmem>>, vector<1x1x32xi32>
    %2 = vector.shape_cast %1 : vector<1x1x32xi32> to vector<1x32xi32>
    %3 = tpu.transpose %2, [1, 0] : vector<1x32xi32> -> vector<32x1xi32>
    %4 = tpu.iota {dimensions = array<i32: 1>} : vector<32x32xi32>
    %5 = vector.broadcast %3 : vector<32x1xi32> to vector<32x32xi32>
    %6 = arith.cmpi eq, %4, %5 : vector<32x32xi32>
    %cst = arith.constant 0.000000e+00 : f32
    %7 = vector.broadcast %cst : f32 to vector<32x32xf32>
    %8 = arith.select %6, %0, %7 : vector<32x32xi1>, vector<32x32xf32>
    %cst_4 = arith.constant dense<0.000000e+00> : vector<32xf32>
    %9 = vector.multi_reduction <add>, %8, %cst_4 [1] : vector<32x32xf32> to vector<32xf32>
    %10 = vector.shape_cast %9 : vector<32xf32> to vector<32x1xf32>
    %cst_5 = arith.constant dense<0xFF800000> : vector<32xf32>
    %11 = vector.multi_reduction <maximumf>, %0, %cst_5 [1] : vector<32x32xf32> to vector<32xf32>
    %12 = vector.shape_cast %11 : vector<32xf32> to vector<32x1xf32>
    %13 = vector.broadcast %12 : vector<32x1xf32> to vector<32x32xf32>
    %14 = arith.subf %0, %13 : vector<32x32xf32>
    %15 = math.exp %14 : vector<32x32xf32>
    %cst_6 = arith.constant dense<0.000000e+00> : vector<32xf32>
    %16 = vector.multi_reduction <add>, %15, %cst_6 [1] : vector<32x32xf32> to vector<32xf32>
    %17 = vector.shape_cast %16 : vector<32xf32> to vector<32x1xf32>
    %18 = math.log %17 : vector<32x1xf32>
    %19 = arith.subf %10, %12 : vector<32x1xf32>
    %20 = arith.subf %19, %18 : vector<32x1xf32>
    %21 = math.exp %20 : vector<32x1xf32>
    %cst_7 = arith.constant 1.000000e+00 : f32
    %22 = vector.broadcast %cst_7 : f32 to vector<32x1xf32>
    %23 = arith.subf %22, %21 : vector<32x1xf32>
    %24 = arith.mulf %23, %23 : vector<32x1xf32>
    %cst_8 = arith.constant 0.000000e+00 : f32
    %25 = vector.broadcast %cst_8 : f32 to vector<32x1xf32>
    %26 = arith.subf %25, %24 : vector<32x1xf32>
    %27 = arith.mulf %26, %20 : vector<32x1xf32>
    %cst_9 = arith.constant 2.500000e-01 : f32
    %28 = vector.broadcast %cst_9 : f32 to vector<32x1xf32>
    %29 = arith.mulf %28, %27 : vector<32x1xf32>
    %c32_i32 = arith.constant 32 : i32
    %30 = arith.muli %arg0, %c32_i32 : i32
    %31 = tpu.iota {dimensions = array<i32: 0>} : vector<32x1xi32>
    %32 = vector.broadcast %30 : i32 to vector<32x1xi32>
    %33 = arith.addi %32, %31 : vector<32x1xi32>
    %c128_i32 = arith.constant 128 : i32
    %34 = vector.broadcast %c128_i32 : i32 to vector<32x1xi32>
    %35 = arith.cmpi slt, %33, %34 : vector<32x1xi32>
    %cst_10 = arith.constant 0.000000e+00 : f32
    %36 = vector.broadcast %cst_10 : f32 to vector<32x1xf32>
    %37 = arith.select %35, %29, %36 : vector<32x1xi1>, vector<32x1xf32>
    %38 = tpu.transpose %37, [1, 0] : vector<32x1xf32> -> vector<1x32xf32>
    %c0_11 = arith.constant 0 : index
    %c0_12 = arith.constant 0 : index
    %c0_13 = arith.constant 0 : index
    %39 = vector.load %arg3[%c0_11, %c0_12, %c0_13] : memref<1x1x32xf32, #tpu.memory_space<vmem>>, vector<1x1x32xf32>
    %40 = vector.shape_cast %39 : vector<1x1x32xf32> to vector<1x32xf32>
    %41 = vector.shape_cast %38 : vector<1x32xf32> to vector<1x1x32xf32>
    tpu.vector_store %arg3[%c0_11, %c0_12, %c0_13], %41 {strides = array<i32>} : memref<1x1x32xf32, #tpu.memory_space<vmem>>, vector<1x1x32xf32>,
    return
  }
  func.func @transform_0(%arg0: i32) -> (i32, i32) {
    %c0_i32 = arith.constant 0 : i32
    %c0_i32_0 = arith.constant 0 : i32
    return %arg0, %c0_i32 : i32, i32
  }
  func.func @transform_1(%arg0: i32) -> (i32, i32, i32) {
    %c0_i32 = arith.constant 0 : i32
    %c0_i32_0 = arith.constant 0 : i32
    %c0_i32_1 = arith.constant 0 : i32
    return %arg0, %c0_i32, %c0_i32_0 : i32, i32, i32
  }
  func.func @transform_2(%arg0: i32) -> (i32, i32, i32) {
    %c0_i32 = arith.constant 0 : i32
    %c0_i32_0 = arith.constant 0 : i32
    %c0_i32_1 = arith.constant 0 : i32
    return %arg0, %c0_i32, %c0_i32_0 : i32, i32, i32
  }
}

</mosaic_0001>

<bundles_post_ra>
// kernel: tpu_custom_call.1
= control target key start
LH: loop header
LB: loop body
LE: loop exit
PB: predicated region body
PF: predicated region fallthrough
CT: control target
= control target key end

     0   :  { %7 = vsyncpa [#allocation3], 0  ;;  %s722_s0 = inlined_call_operand.vmem [shape: f32[128,32], index: 0, kind: input, shape index: {}]   ;;  %s723_s1 = inlined_call_operand.vmem [shape: s32[4,1,32], index: 1, kind: input, shape index: {}]   ;;  %s724_s2 = inlined_call_operand.hbm [shape: f32[4,1,32], index: 2, kind: output, shape index: {}]  }
   0x1   :  { %9 = vsyncpa [#allocation3 + $0x1], 0  ;;  %s595_s9 = smov 0   ;;  %s597_s10 = smov 0  }
   0x2   :  { %s599_s11 = smov 0   ;;  %s601_s12 = smov 0  }
   0x3 LB: > { %s616_s13 = sadd.s32 4294967295, %s576_s12   ;;  %s439_s14 = sadd.s32 4294967294, %s576_s12   ;;  %s576_s12 = sphi %s601_s12, %s730_s12   ;;  %s572_s11 = sphi %s599_s11, %s729_s11   ;;  %s568_s10 = sphi %s597_s10, %s728_s10   ;;  %s564_s9 = sphi %s595_s9, %s727_s9  }
   0x4   : > { %s620_s15 = sadd.s32 1, %s576_s12   ;;  %s74_s16 = sadd.s32 1, %s572_s11 }
   0x5   : > { %s71_s17 = ssub.s32 %s576_s12, %s620_s15  ;;  %p84_p0 = scmp.ne.s32.totalorder %s572_s11, %s568_s10 }
   0x6   : > { %p72_p1 = scmp.eq.s32.totalorder %s71_s17, 0  ;;  %p85_p2 = scmp.eq.s32.totalorder %s616_s13, 3 }
   0x7   : > { %p90_p3 = scmp.ne.s32.totalorder %s568_s10, %s564_s9  ;;  %p91_p4 = scmp.eq.s32.totalorder %s439_s14, 3 }
   0x8   : > { %s631_s18 = scalar_select %p72_p1, %s572_s11, %s74_s16  }
   0x9   : > { %p633_p5 = por %p85_p2, %p84_p0  ;;  %p637_p6 = por %p91_p4, %p90_p3 }
   0xa   : > { %p442_p7 = scmp.ge.s32.totalorder %s576_s12, 1  ;;  %p124_p8 = scmp.lt.s32.totalorder %s576_s12, 5 }
   0xc   : > { %p125_p9 = pnand %p442_p7, %p124_p8 }
   0xd   : > { %p154_p10 = scmp.lt.s32.totalorder (!%p125_p9), %s616_s13, 3  ;;  %s443_s21 = sshll.u32 (!%p125_p9), %s616_s13, 2 }
   0xe   : > { %128 = sbr.rel (%p125_p9) target bundleno = 582 (0x246), region = 28  ;;  %p149_p11 = scmp.lt.s32.totalorder (!%p125_p9), %s443_s21, 15 }
   0xf   : > { %s445_s30 = sshll.u32 (!%p125_p9), %s616_s13, 5  ;;  %s146_s3 = sand.u32 (!%p125_p9), 1, %s568_s10  }
  0x10   : > { %s446_s4 = sshll.u32 (!%p125_p9), %s616_s13, 4  ;;  %s147_s5 = scalar_lea.vmem (!%p125_p9), [#allocation2], %s146_s3 }
  0x11   : > { %s375_s6 = sshll.u32 (!%p125_p9), %s147_s5, 4  ;;  %s687_s14 = scalar_lea.hbm (!%p125_p9), %s724_s2, %s446_s4  ;;  %s376_s6 = int_to_ptr.vmem [resolvable:$true] %s375_s6 }
  0x12   : > { %s363_s16 = scalar_lea.sflag (!%p125_p9), [#allocation3], %s146_s3  ;;  %s516_s17 = scalar_lea.vmem (!%p125_p9), %s376_s6, 16 }
  0x13   : > { %v578_v0 = vmov 0   ;;  %s155_s22 = scalar_select %p154_p10, %s616_s13, 3  ;;  %vm216_vm0 = vcmask 261120   ;;  %v194_v34 = vlaneseq  ;;  %vm360_vm9 = vcmask 253952  }
  0x14   : > { %490 = vset.pattern.permute.xlu0 %v578_v0  ;;  %s732_s21 = smov (!%p149_p11, %s443_s21), 15  ;;  %p517_p12 = scmp.ne.s32.totalorder %s376_s6, %s516_s17 }
  0x15   : > { %s156_s25 = scalar_lea.vmem %s723_s1, %s155_s22  ;;  %s444_s26 = sshll.u32 %s732_s21, 3  ;;  %v195_v35 = vand.u32 127, %v194_v34 }
  0x16   : > { %v161_v1 = vld [vmem:[%s156_s25] sm:$0x1]  ;;  %s152_s29 = scalar_lea.vmem %s722_s0, %s444_s26  ;;  %p518_p13 = pnand %p517_p12, %p633_p5 }
  0x17   : > { %162 = vxpose.xlu1.b32.start.end [1/1] (short) (narrow) %v161_v1, 32  ;;  %v157_v2 = vld [vmem:[%s152_s29] sm:$0xff]  ;;  %v158_v3 = vld [vmem:[%s152_s29 + $0x8] sm:$0xff]  ;;  %v654_v6 = vld [vmem:[%s152_s29 + $0x18] sm:$0xff]  ;;  %s579_s21 = smov [#allocation2]  }
  0x18   : > { %v229_v4 = vsel %vm216_vm0, %v157_v2, -inf  ;;  %v232_v5 = vsel %vm216_vm0, %v158_v3, -inf  ;;  %v238_v7 = vsel %vm216_vm0, %v654_v6, -inf  ;;  %v159_v8 = vld [vmem:[%s152_s29 + $0x10] sm:$0xff]  ;;  %p519_p0 = pneg %p518_p13  ;;  %s520_s22 = sshll.u32 %s579_s21, 4  ;;  %s521_s22 = int_to_ptr.vmem [resolvable:$false] %s520_s22 }
  0x19   : > { %230 = vmax.xlane.f32.xlu0 %v229_v4  ;;  %v235_v9 = vsel %vm216_vm0, %v159_v8, -inf  ;;  %s522_s13 = scalar_lea.vmem %s521_s22, 32  ;;  %p523_p1 = scmp.lt.s32.totalorder %s376_s6, %s521_s22 }
  0x1a   : > { %p524_p2 = scmp.lt.s32.totalorder %s522_s13, %s516_s17 }
  0x1c   : > { %p525_p3 = por %p524_p2, %p523_p1 }
  0x1d   : > { %233 = vmax.xlane.f32.xlu0 %v232_v5 }
  0x1e   : > { %p526_p4 = pnand %p525_p3, %p519_p0 }
  0x21   : > { %239 = vmax.xlane.f32.xlu0 %v238_v7 }
  0x35   : > { %491 = vset.pattern.permute.xlu1 %v578_v0 }
  0x4a   : > { %236 = vmax.xlane.f32.xlu1 %v235_v9 }
  0x93   : > { %v178_v10 = vpop.trf.xlu1 }
  0x94   : > { %197 = vperm.xlu0 %490, %v178_v10  }
  0x97   : > { %v179_v11 = vpop.trf.xlu1 }
  0x98   : > { %200 = vperm.xlu1 %491, %v179_v11  }
  0x9b   : > { %v180_v12 = vpop.trf.xlu1 }
  0x9c   : > { %203 = vperm.xlu0 %490, %v180_v12  }
  0x9f   : > { %v181_v13 = vpop.trf.xlu1 }
  0xa0   : > { %206 = vperm.xlu0 %490, %v181_v13   ;;  %v311_v13 = vshrl.u32 %v194_v34, 7 }
  0xa2   : > { %v659_v14 = vpop.xlane.xlu0 %230 }
  0xa3   : > { %v241_v15 = vsub.f32 %v157_v2, %v659_v14 }
  0xa5   : > { %v245_v16 = vmul.f32 1.442695, %v241_v15  ;;  %v315_v15 = vstv %s445_s30 }
  0xa6   : > { %v662_v17 = vpop.xlane.xlu0 %233 }
  0xa7   : > { %v242_v18 = vsub.f32 %v158_v3, %v662_v17  ;;  %492 = vpow2.f32 %v245_v16 }
  0xa9   : > { %v247_v19 = vmul.f32 1.442695, %v242_v18  ;;  %v316_v18 = vadd.s32 %v315_v15, %v311_v13 }
  0xaa   : > { %v667_v24 = vpop.xlane.xlu0 %239 }
  0xab   : > { %494 = vpow2.f32 %v247_v19  ;;  %v244_v25 = vsub.f32 %v654_v6, %v667_v24  ;;  %v312_v19 = vadd.s32 8, %v311_v13  ;;  %vm320_vm5 = vcmp.lt.s32.totalorder %v316_v18, 128 }
  0xad   : > { %v251_v27 = vmul.f32 1.442695, %v244_v25 }
  0xaf   : > { %496 = vpow2.f32 %v251_v27 }
  0xb4   : > { %v493_v20 = vpop.eup %492 }
  0xb5   : > { %v253_v23 = vsel %vm216_vm0, %v493_v20, 0.0 }
  0xb8   : > { %v495_v21 = vpop.eup %494 }
  0xb9   : > { %v256_v22 = vsel %vm216_vm0, %v495_v21, 0.0 }
  0xbc   : > { %257 = vadd.xlane.f32.xlu1 %v256_v22  ;;  %v497_v30 = vpop.eup %496 }
  0xbd   : > { %v262_v33 = vsel %vm216_vm0, %v497_v30, 0.0 }
  0xbf   : > { %254 = vadd.xlane.f32.xlu0 %v253_v23 }
  0xd3   : > { %v237_v26 = vpop.xlane.xlu1 %236 }
  0xd4   : > { %v243_v28 = vsub.f32 %v159_v8, %v237_v26 }
  0xd6   : > { %v249_v29 = vmul.f32 1.442695, %v243_v28 }
  0xd8   : > { %498 = vpow2.f32 %v249_v29 }
  0xe5   : > { %v499_v31 = vpop.eup %498 }
  0xe6   : > { %v259_v32 = vsel %vm216_vm0, %v499_v31, 0.0 }
  0xe7   : > { %260 = vadd.xlane.f32.xlu0 %v259_v32 }
  0xeb   : > { %263 = vadd.xlane.f32.xlu0 %v262_v33 }
 0x10f   : > { %v198_v36 = vpop.permute.xlu0 %197 }
 0x110   : > { %vm208_vm1 = vcmp.eq.s32.totalorder %v195_v35, %v198_v36 }
 0x111   : > { %v212_v37 = vsel %vm208_vm1, %v157_v2, 0.0 }
 0x112   : > { %v217_v38 = vsel %vm216_vm0, %v212_v37, 0.0 }
 0x113   : > { %v201_v39 = vpop.permute.xlu1 %200  ;;  %218 = vadd.xlane.f32.xlu0 %v217_v38 }
 0x114   : > { %vm209_vm2 = vcmp.eq.s32.totalorder %v195_v35, %v201_v39 }
 0x115   : > { %v213_v40 = vsel %vm209_vm2, %v158_v3, 0.0 }
 0x116   : > { %v220_v41 = vsel %vm216_vm0, %v213_v40, 0.0 }
 0x117   : > { %221 = vadd.xlane.f32.xlu0 %v220_v41  ;;  %v204_v42 = vpop.permute.xlu0 %203 }
 0x118   : > { %vm210_vm3 = vcmp.eq.s32.totalorder %v195_v35, %v204_v42 }
 0x119   : > { %v214_v43 = vsel %vm210_vm3, %v159_v8, 0.0 }
 0x11a   : > { %v223_v44 = vsel %vm216_vm0, %v214_v43, 0.0 }
 0x11b   : > { %224 = vadd.xlane.f32.xlu1 %v223_v44  ;;  %v207_v45 = vpop.permute.xlu0 %206 }
 0x11c   : > { %vm211_vm4 = vcmp.eq.s32.totalorder %v195_v35, %v207_v45  ;;  %v314_v35 = vadd.s32 24, %v311_v13 }
 0x11d   : > { %v215_v46 = vsel %vm211_vm4, %v654_v6, 0.0 }
 0x11e   : > { %v226_v47 = vsel %vm216_vm0, %v215_v46, 0.0  ;;  %v319_v42 = vadd.s32 %v315_v15, %v314_v35 }
 0x11f   : > { %227 = vadd.xlane.f32.xlu0 %v226_v47 }
 0x120   : > { %vm323_vm8 = vcmp.lt.s32.totalorder %v319_v42, 128 }
 0x145   : > { %v258_v49 = vpop.xlane.xlu1 %257 }
 0x148   : > { %v255_v48 = vpop.xlane.xlu0 %254 }
 0x149   : > { %500 = vlog2.f32 %v255_v48 }
 0x14a   : > { %502 = vlog2.f32 %v258_v49 }
 0x156   : > { %v501_v52 = vpop.eup %500 }
 0x157   : > { %v266_v53 = vmul.f32 0.6931472, %v501_v52  ;;  %v503_v54 = vpop.eup %502 }
 0x158   : > { %v268_v57 = vmul.f32 0.6931472, %v503_v54 }
 0x170   : > { %v261_v50 = vpop.xlane.xlu0 %260 }
 0x171   : > { %504 = vlog2.f32 %v261_v50 }
 0x174   : > { %v264_v51 = vpop.xlane.xlu0 %263 }
 0x175   : > { %506 = vlog2.f32 %v264_v51 }
 0x17e   : > { %v505_v62 = vpop.eup %504 }
 0x17f   : > { %v270_v1 = vmul.f32 0.6931472, %v505_v62 }
 0x182   : > { %v507_v4 = vpop.eup %506 }
 0x183   : > { %v272_v7 = vmul.f32 0.6931472, %v507_v4 }
 0x19c   : > { %v219_v55 = vpop.xlane.xlu0 %218 }
 0x19d   : > { %v273_v56 = vsub.f32 %v219_v55, %v659_v14 }
 0x19f   : > { %v277_v58 = vsub.f32 %v273_v56, %v266_v53 }
 0x1a0   : > { %v222_v59 = vpop.xlane.xlu0 %221 }
 0x1a1   : > { %v281_v60 = vmul.f32 1.442695, %v277_v58  ;;  %v274_v61 = vsub.f32 %v222_v59, %v662_v17 }
 0x1a3   : > { %508 = vpow2.f32 %v281_v60  ;;  %v278_v63 = vsub.f32 %v274_v61, %v268_v57 }
 0x1a4   : > { %v225_v0 = vpop.xlane.xlu1 %224 }
 0x1a5   : > { %v283_v2 = vmul.f32 1.442695, %v278_v63  ;;  %v275_v3 = vsub.f32 %v225_v0, %v237_v26  ;;  %v313_v26 = vadd.s32 16, %v311_v13 }
 0x1a7   : > { %510 = vpow2.f32 %v283_v2  ;;  %v279_v5 = vsub.f32 %v275_v3, %v270_v1  ;;  %v318_v34 = vadd.s32 %v315_v15, %v313_v26 }
 0x1a8   : > { %v228_v6 = vpop.xlane.xlu0 %227 }
 0x1a9   : > { %v285_v8 = vmul.f32 1.442695, %v279_v5  ;;  %v276_v9 = vsub.f32 %v228_v6, %v667_v24  ;;  %v317_v24 = vadd.s32 %v315_v15, %v312_v19  ;;  %vm322_vm7 = vcmp.lt.s32.totalorder %v318_v34, 128 }
 0x1ab   : > { %512 = vpow2.f32 %v285_v8  ;;  %v280_v10 = vsub.f32 %v276_v9, %v272_v7  ;;  %vm321_vm6 = vcmp.lt.s32.totalorder %v317_v24, 128 }
 0x1ad   : > { %v287_v11 = vmul.f32 1.442695, %v280_v10 }
 0x1af   : > { %514 = vpow2.f32 %v287_v11 }
 0x1b0   : > { %v509_v12 = vpop.eup %508 }
 0x1b1   : > { %v289_v14 = vsub.f32 1.0, %v509_v12 }
 0x1b3   : > { %v293_v16 = vmul.f32 %v289_v14, %v289_v14 }
 0x1b4   : > { %v511_v17 = vpop.eup %510 }
 0x1b5   : > { %v297_v20 = vsub.f32 0.0, %v293_v16  ;;  %v290_v21 = vsub.f32 1.0, %v511_v17 }
 0x1b7   : > { %v301_v22 = vmul.f32 %v297_v20, %v277_v58  ;;  %v294_v23 = vmul.f32 %v290_v21, %v290_v21 }
 0x1b8   : > { %v513_v25 = vpop.eup %512 }
 0x1b9   : > { %v305_v27 = vmul.f32 0.25, %v301_v22  ;;  %v298_v28 = vsub.f32 0.0, %v294_v23  ;;  %v291_v29 = vsub.f32 1.0, %v513_v25 }
 0x1bb   : > { %v302_v30 = vmul.f32 %v298_v28, %v278_v63  ;;  %v295_v31 = vmul.f32 %v291_v29, %v291_v29  ;;  %v324_v32 = vsel %vm320_vm5, %v305_v27, 0.0 }
 0x1bc   : > { %v515_v33 = vpop.eup %514  ;;  %328 = vxpose.xlu1.b32.start [1/4] (short) (narrow) %v324_v32, 8 }
 0x1bd   : > { %v306_v36 = vmul.f32 0.25, %v302_v30  ;;  %v299_v37 = vsub.f32 0.0, %v295_v31  ;;  %v292_v38 = vsub.f32 1.0, %v515_v33 }
 0x1bf   : > { %v303_v39 = vmul.f32 %v299_v37, %v279_v5  ;;  %v296_v40 = vmul.f32 %v292_v38, %v292_v38  ;;  %v325_v41 = vsel %vm321_vm6, %v306_v36, 0.0 }
 0x1c0   : > { %329 = vxpose.xlu1.b32.cont [2/4] (short) (narrow) %v325_v41, 8 }
 0x1c1   : > { %v307_v43 = vmul.f32 0.25, %v303_v39  ;;  %v300_v44 = vsub.f32 0.0, %v296_v40 }
 0x1c3   : > { %v304_v45 = vmul.f32 %v300_v44, %v280_v10  ;;  %v326_v46 = vsel %vm322_vm7, %v307_v43, 0.0 }
 0x1c4   : > { %330 = vxpose.xlu1.b32.cont [3/4] (short) (narrow) %v326_v46, 8 }
 0x1c5   : > { %v308_v47 = vmul.f32 0.25, %v304_v45 }
 0x1c7   : > { %v327_v48 = vsel %vm323_vm8, %v308_v47, 0.0 }
 0x1c8   : > { %331 = vxpose.xlu1.b32.end [4/4] (short) (narrow) %v327_v48, 8 }
 0x238   : > { %v344_v49 = vpop.trf.xlu1 }
 0x239   : > { %361 = vst.msk [vmem:[%s147_s5] sm:$0x1] %vm360_vm9, %v344_v49 }
 0x23a   : > { %529 = shalt.err (!%p526_p4)
}
 0x23b   : > { %s530_s23 = scalar_lea.hbm %s687_s14, 16  ;;  %s534_s26 = scalar_lea.hbm %s724_s2, 64 }
 0x23c   : > { %p531_p7 = scmp.ne.s32.totalorder %s687_s14, %s530_s23  ;;  %p535_p10 = scmp.lt.s32.totalorder %s687_s14, %s724_s2 }
 0x23d   : > { %p536_p11 = scmp.lt.s32.totalorder %s534_s26, %s530_s23 }
 0x23e   : > { %p532_p8 = pnand %p531_p7, %p633_p5 }
 0x23f   : > { %p537_p12 = por %p536_p11, %p535_p10 }
 0x240   : > { %p533_p9 = pneg %p532_p8 }
 0x242   : > { %p538_p13 = pnand %p537_p12, %p533_p9 }
 0x244   : > { %541 = shalt.err (!%p538_p13)
}
 0x245   : > { %449 = dma.vmem_to_hbm [thread:$0]  (%p633_p5), %s376_s6, 16, %s687_s14, %s363_s16  }
 0x246 PF: > { %p455_p0 = scmp.ge.s32.totalorder %s576_s12, 2  ;;  %s387_s29 = sand.u32 1, %s564_s9  }
 0x247   : > { %s388_s30 = scalar_lea.sflag [#allocation3], %s387_s29 }
 0x248   : > { %p452_p1 = pnand %p455_p0, %p637_p6 }
 0x24a   : > { %p453_p2 = pneg %p452_p1 }
 0x24c   : > { %559 = dma.done.wait (%p453_p2), %s388_s30, 16  }
 0x24d   : > { %561 = vsyncadd (%p453_p2), %s388_s30, 4294967280  ;;  %p12_p3 = scmp.ge.s32.totalorder %s620_s15, 6   ;;  %s727_s9 = smov %s568_s10 }
 0x24e   : > { %s728_s10 = smov %s572_s11  ;;  %s729_s11 = smov %s631_s18 }
 0x24f   : > { %s730_s12 = smov %s620_s15  ;;  %14 = sbr.rel (!%p12_p3) target bundleno = 3 (0x3), region = 66 }
 0x254   :  { %392 = vsyncpa [#allocation3], 1 }
 0x255   :  { %394 = vsyncpa [#allocation3 + $0x1], 1 }

</bundles_post_ra>
